<compile_context>
chip_gen: v6e
topology: v6e:2x2x1
jax: 0.10.0
libtpu: 0.0.40
codegen_flags: <defaults>
</compile_context>

<pallas_src>
import jax
import jax.numpy as jnp
from jax.experimental import pallas as pl
from jax.experimental.pallas import tpu as pltpu


def _round_up(x, m):
    return ((x + m - 1) // m) * m


def _choose_batch_tile(B, max_tile=1024):
    """Batch tile: big enough to amortize ~0.35us/step overhead, at least two
    grid steps when possible (v7x megacore), and <= ~25% padded-row waste."""
    B16 = _round_up(B, 16)            # 16: bf16 sublane packing granularity
    if B16 <= 32:
        return 16
    TB = min(max_tile, _round_up((B16 + 1) // 2, 16))
    while TB > 16:
        B_pad = _round_up(B, TB)
        if (B_pad - B) * 4 <= B_pad:  # padded-row waste <= 25%
            break
        TB = _round_up(TB // 2, 16)
    return TB


def _dfm_kernel(deep_ref, fm1_ref, g_ref, w1_ref, b1_ref, w2_ref, b2w3_ref,
                head_ref, b3_ref, out_ref):
    deep = deep_ref[...]                        # (TB, FE) bf16
    fm_first = fm1_ref[...]                     # (TB, 1)  f32

    # ---- FM second order: 0.5 * deep (S S^T - I) deep^T, one bf16 MXU pass ----
    dg = jnp.dot(deep, g_ref[...], preferred_element_type=jnp.float32)   # (TB, FE)
    fm_second = 0.5 * jnp.sum(deep.astype(jnp.float32) * dg,
                              axis=1, keepdims=True)                     # (TB, 1)

    # ---- deep MLP: Linear(+folded eval BN) -> ReLU -> Dropout(eval)=id, x3 ----
    h = jnp.dot(deep, w1_ref[...], preferred_element_type=jnp.float32) + b1_ref[...]
    h = jnp.maximum(h, 0.0)                                              # (TB, H1)
    b2w3 = b2w3_ref[...]                                                 # (2, H2)
    h = jnp.dot(h.astype(jnp.bfloat16), w2_ref[...],
                preferred_element_type=jnp.float32) + b2w3[0:1, :]
    h = jnp.maximum(h, 0.0)                                              # (TB, H2)
    # last layer (H2 -> 1) as VPU multiply + lane reduce (skip the N=1 matmul)
    h = jnp.sum(h * b2w3[1:2, :], axis=1, keepdims=True) + b3_ref[0]
    h = jnp.maximum(h, 0.0)                                              # (TB, 1)

    # ---- head: stack(fm_first, fm_second, h) @ wf + bf, as broadcast FMAs ----
    head = head_ref[...]                                                 # (4, C) = [wf; bf]
    logits = (fm_first * head[0:1, :] + fm_second * head[1:2, :]
              + h * head[2:3, :] + head[3:4, :])                         # (TB, C)

    # numerically stable sigmoid (exp on EUP, no inf/overflow)
    e = jnp.exp(-jnp.abs(logits))
    r = 1.0 / (1.0 + e)
    out_ref[...] = jnp.where(logits >= 0.0, r, e * r)


def prepare_dfm_params(params, *, embedding_size):
    """One-time (per model, not per call) folding/packing into kernel operands."""
    F = len(params["so_emb"])
    E = embedding_size
    FE = F * E
    bf16 = jnp.bfloat16

    def fold(li):
        w = params[f"w{li}"] * params[f"s{li}"]
        b = params[f"b{li}"] * params[f"s{li}"] + params[f"t{li}"]
        return w, b

    w1, b1 = fold(1)
    w2, b2 = fold(2)
    w3, b3 = fold(3)

    # Block-sum matrix S: S[f*E + e, e] = 1; G = S S^T - I gives the FM
    # second-order quadratic form  0.5 * deep G deep^T.
    idx = jnp.arange(FE)
    S = jnp.zeros((FE, E), jnp.float32).at[idx, idx % E].set(1.0)
    G = S @ S.T - jnp.eye(FE, dtype=jnp.float32)

    return {
        "fo_emb": params["fo_emb"],
        "so_emb": [t.astype(bf16) for t in params["so_emb"]],   # bf16 gathers
        "g": G.astype(bf16),
        "w1": w1.astype(bf16),
        "b1": b1.astype(jnp.float32),
        "w2": w2.astype(bf16),
        "b2w3": jnp.concatenate([b2, w3.T], axis=0).astype(jnp.float32),  # (2, H2)
        "b3": b3.reshape(-1).astype(jnp.float32),                          # (1,) SMEM scalar
        "head": jnp.concatenate([params["wf"], params["bf"]],
                                axis=0).astype(jnp.float32),                # (4, C)
        "F": F, "E": E, "FE": FE,
    }


def dfm_forward(fields, kp, *, max_batch_tile=1024):
    """fields: list of (B,) int32 index arrays, one per feature field."""
    X = jnp.stack(fields, axis=1)                                    # (B, F)
    B, F = X.shape
    FE = kp["FE"]

    # Embedding gathers (data-dependent; kept in plain JAX glue).
    fo = jnp.concatenate([kp["fo_emb"][i][X[:, i]] for i in range(F)], axis=1)   # (B, F)  f32
    deep = jnp.concatenate([kp["so_emb"][i][X[:, i]] for i in range(F)], axis=1)  # (B, FE) bf16
    fm_first = jnp.sum(fo, axis=1, keepdims=True)                                 # (B, 1)  f32

    # Batch tiling (>=2 grid steps when possible; <=25% pad waste).
    TB = _choose_batch_tile(B, max_batch_tile)
    B_pad = _round_up(B, TB)
    if B_pad != B:
        deep_c = jnp.zeros((B_pad, FE), jnp.bfloat16).at[:B].set(deep)
        fm1_c = jnp.zeros((B_pad, 1), jnp.float32).at[:B].set(fm_first)
    else:
        deep_c, fm1_c = deep, fm_first

    H1 = kp["w1"].shape[1]
    H2 = kp["w2"].shape[1]
    C = kp["head"].shape[1]
    grid = (B_pad // TB,)
    resident = lambda i: (0, 0)

    out = pl.pallas_call(
        _dfm_kernel,
        out_shape=jax.ShapeDtypeStruct((B_pad, C), jnp.float32),
        grid=grid,
        in_specs=[
            pl.BlockSpec((TB, FE), lambda i: (i, 0)),           # deep (batch-tiled, bf16)
            pl.BlockSpec((TB, 1), lambda i: (i, 0)),            # fm_first (batch-tiled)
            pl.BlockSpec((FE, FE), resident),                   # G = S S^T - I (resident)
            pl.BlockSpec((FE, H1), resident),                   # folded w1 (resident)
            pl.BlockSpec((1, H1), resident),                    # folded b1
            pl.BlockSpec((H1, H2), resident),                   # folded w2
            pl.BlockSpec((2, H2), resident),                    # packed [b2; w3^T]
            pl.BlockSpec((4, C), resident),                     # packed [wf; bf]
            pl.BlockSpec(memory_space=pltpu.MemorySpace.SMEM),  # b3 scalar
        ],
        out_specs=pl.BlockSpec((TB, C), lambda i: (i, 0)),
        compiler_params=pltpu.CompilerParams(
            dimension_semantics=("parallel",)),
    )(deep_c, fm1_c, kp["g"], kp["w1"], kp["b1"], kp["w2"], kp["b2w3"],
      kp["head"], kp["b3"])

    return out[:B]


def dfm_reference(fields, params, *, embedding_size):
    """Pure-JAX f32 reference mirroring the PyTorch forward (eval semantics)."""
    X = jnp.stack(fields, axis=1)
    B, F = X.shape
    fo = jnp.concatenate([params["fo_emb"][i][X[:, i]] for i in range(F)], axis=1)
    so = jnp.stack([params["so_emb"][i][X[:, i]] for i in range(F)], axis=0)   # (F, B, E)
    fm_first = jnp.sum(fo, axis=1)
    sum_sq = jnp.sum(so, axis=0) ** 2
    sq_sum = jnp.sum(so ** 2, axis=0)
    fm_second = jnp.sum(0.5 * (sum_sq - sq_sum), axis=1)
    deep = jnp.concatenate([params["so_emb"][i][X[:, i]] for i in range(F)], axis=1)
    h = deep
    for li in (1, 2, 3):
        h = h @ params[f"w{li}"] + params[f"b{li}"]
        h = jnp.maximum(h * params[f"s{li}"] + params[f"t{li}"], 0.0)
    stacked = jnp.stack([fm_first, fm_second, h[:, 0]], axis=1)
    logits = stacked @ params["wf"] + params["bf"]
    return jax.nn.sigmoid(logits)


def init_params(key, feature_sizes, embedding_size, hidden_dims, num_class):
    F = len(feature_sizes)
    E = embedding_size
    eps = 1e-5

    def nxt():
        nonlocal key
        key, sub = jax.random.split(key)
        return sub

    params = {}
    params["fo_emb"] = [0.1 * jax.random.normal(nxt(), (s, 1), jnp.float32)
                        for s in feature_sizes]
    params["so_emb"] = [0.1 * jax.random.normal(nxt(), (s, E), jnp.float32)
                        for s in feature_sizes]

    all_dims = [F * E] + list(hidden_dims) + [1]
    for li in range(len(all_dims) - 1):
        din, dout = all_dims[li], all_dims[li + 1]
        w = jax.random.normal(nxt(), (din, dout), jnp.float32) / jnp.sqrt(float(din))
        b = 0.01 * jax.random.normal(nxt(), (1, dout), jnp.float32)
        # BatchNorm1d default init (eval mode): gamma=1, beta=0, mean=0, var=1.
        gamma = jnp.ones((1, dout), jnp.float32)
        beta = jnp.zeros((1, dout), jnp.float32)
        mean = jnp.zeros((1, dout), jnp.float32)
        var = jnp.ones((1, dout), jnp.float32)
        scale = gamma / jnp.sqrt(var + eps)
        shift = beta - mean * scale
        params[f"w{li + 1}"] = w
        params[f"b{li + 1}"] = b
        params[f"s{li + 1}"] = scale
        params[f"t{li + 1}"] = shift

    params["wf"] = jax.random.normal(nxt(), (3, num_class), jnp.float32) / jnp.sqrt(3.0)
    params["bf"] = 0.01 * jax.random.normal(nxt(), (1, num_class), jnp.float32)
    return params


if __name__ == "__main__":
    feature_sizes = [13, 7, 21, 9, 30, 16]   # 6 categorical fields
    embedding_size = 5
    hidden_dims = [256, 128]
    num_class = 1
    batch = 8

    key = jax.random.PRNGKey(0)
    pkey, dkey = jax.random.split(key)
    params = init_params(pkey, feature_sizes, embedding_size, hidden_dims, num_class)
    kparams = prepare_dfm_params(params, embedding_size=embedding_size)

    fkeys = jax.random.split(dkey, len(feature_sizes))
    fields = [jax.random.randint(fkeys[i], (batch,), 0, feature_sizes[i], dtype=jnp.int32)
              for i in range(len(feature_sizes))]

    out = dfm_forward(fields, kparams)
    out = jax.block_until_ready(out)

    ref = dfm_reference(fields, params, embedding_size=embedding_size)
    assert out.shape == (batch, num_class), out.shape
    # bf16 MXU operands -> looser tolerance than a pure-f32 path.
    assert jnp.allclose(out, ref, atol=2e-2, rtol=2e-2), (out, ref)
    print("KERNEL_OK")
</pallas_src>

<mosaic_0001>
module attributes {stable_mosaic.version = 11 : i64} {
  func.func @_dfm_kernel(%arg0: i32, %arg1: memref<16x30xbf16, #tpu.memory_space<vmem>>, %arg2: memref<16x1xf32, #tpu.memory_space<vmem>>, %arg3: memref<30x30xbf16, #tpu.memory_space<vmem>>, %arg4: memref<30x256xbf16, #tpu.memory_space<vmem>>, %arg5: memref<1x256xf32, #tpu.memory_space<vmem>>, %arg6: memref<256x128xbf16, #tpu.memory_space<vmem>>, %arg7: memref<2x128xf32, #tpu.memory_space<vmem>>, %arg8: memref<4x1xf32, #tpu.memory_space<vmem>>, %arg9: memref<1xf32, #tpu.memory_space<smem>>, %arg10: memref<16x1xf32, #tpu.memory_space<vmem>>) attributes {dimension_semantics = [#tpu.dimension_semantics<parallel>], iteration_bounds = array<i64: 1>, scalar_prefetch = 0 : i64, scratch_operands = 0 : i64, tpu.core_type = #tpu.core_type<tc>, window_params = [{transform_indices = @transform_0, window_bounds = array<i64: 16, 30>}, {transform_indices = @transform_1, window_bounds = array<i64: 16, 1>}, {pipeline_mode = #tpu.pipeline_mode<synchronous>, transform_indices = @transform_2, window_bounds = array<i64: 30, 30>}, {pipeline_mode = #tpu.pipeline_mode<synchronous>, transform_indices = @transform_3, window_bounds = array<i64: 30, 256>}, {pipeline_mode = #tpu.pipeline_mode<synchronous>, transform_indices = @transform_4, window_bounds = array<i64: 1, 256>}, {pipeline_mode = #tpu.pipeline_mode<synchronous>, transform_indices = @transform_5, window_bounds = array<i64: 256, 128>}, {pipeline_mode = #tpu.pipeline_mode<synchronous>, transform_indices = @transform_6, window_bounds = array<i64: 2, 128>}, {pipeline_mode = #tpu.pipeline_mode<synchronous>, transform_indices = @transform_7, window_bounds = array<i64: 4, 1>}, {transform_indices = @transform_8, window_bounds = array<i64: 1>}, {transform_indices = @transform_9, window_bounds = array<i64: 16, 1>}]} {
    %c0 = arith.constant 0 : index
    %c0_0 = arith.constant 0 : index
    %0 = vector.load %arg1[%c0, %c0_0] : memref<16x30xbf16, #tpu.memory_space<vmem>>, vector<16x30xbf16>
    %c0_1 = arith.constant 0 : index
    %c0_2 = arith.constant 0 : index
    %1 = vector.load %arg2[%c0_1, %c0_2] : memref<16x1xf32, #tpu.memory_space<vmem>>, vector<16x1xf32>
    %c0_3 = arith.constant 0 : index
    %c0_4 = arith.constant 0 : index
    %2 = vector.load %arg3[%c0_3, %c0_4] : memref<30x30xbf16, #tpu.memory_space<vmem>>, vector<30x30xbf16>
    %cst = arith.constant dense<0.000000e+00> : vector<16x30xf32>
    %3 = tpu.matmul %0, %2, %cst {dimension_numbers = #tpu.dot_dimension_numbers<[1], [0], [0], [1], [0, 0, 1, 1], [], []>} : vector<16x30xbf16>, vector<30x30xbf16>, vector<16x30xf32> -> vector<16x30xf32>
    %4 = arith.extf %0 : vector<16x30xbf16> to vector<16x30xf32>
    %5 = arith.mulf %4, %3 : vector<16x30xf32>
    %cst_5 = arith.constant dense<0.000000e+00> : vector<16xf32>
    %6 = vector.multi_reduction <add>, %5, %cst_5 [1] : vector<16x30xf32> to vector<16xf32>
    %7 = vector.shape_cast %6 : vector<16xf32> to vector<16x1xf32>
    %cst_6 = arith.constant 5.000000e-01 : f32
    %8 = vector.broadcast %cst_6 : f32 to vector<16x1xf32>
    %9 = arith.mulf %8, %7 : vector<16x1xf32>
    %c0_7 = arith.constant 0 : index
    %c0_8 = arith.constant 0 : index
    %10 = vector.load %arg4[%c0_7, %c0_8] : memref<30x256xbf16, #tpu.memory_space<vmem>>, vector<30x256xbf16>
    %cst_9 = arith.constant dense<0.000000e+00> : vector<16x256xf32>
    %11 = tpu.matmul %0, %10, %cst_9 {dimension_numbers = #tpu.dot_dimension_numbers<[1], [0], [0], [1], [0, 0, 1, 1], [], []>} : vector<16x30xbf16>, vector<30x256xbf16>, vector<16x256xf32> -> vector<16x256xf32>
    %c0_10 = arith.constant 0 : index
    %c0_11 = arith.constant 0 : index
    %12 = vector.load %arg5[%c0_10, %c0_11] : memref<1x256xf32, #tpu.memory_space<vmem>>, vector<1x256xf32>
    %13 = vector.broadcast %12 : vector<1x256xf32> to vector<16x256xf32>
    %14 = arith.addf %11, %13 : vector<16x256xf32>
    %cst_12 = arith.constant 0.000000e+00 : f32
    %15 = vector.broadcast %cst_12 : f32 to vector<16x256xf32>
    %16 = arith.maximumf %14, %15 : vector<16x256xf32>
    %c0_13 = arith.constant 0 : index
    %c0_14 = arith.constant 0 : index
    %17 = vector.load %arg7[%c0_13, %c0_14] : memref<2x128xf32, #tpu.memory_space<vmem>>, vector<2x128xf32>
    %18 = arith.truncf %16 : vector<16x256xf32> to vector<16x256xbf16>
    %c0_15 = arith.constant 0 : index
    %c0_16 = arith.constant 0 : index
    %19 = vector.load %arg6[%c0_15, %c0_16] : memref<256x128xbf16, #tpu.memory_space<vmem>>, vector<256x128xbf16>
    %cst_17 = arith.constant dense<0.000000e+00> : vector<16x128xf32>
    %20 = tpu.matmul %18, %19, %cst_17 {dimension_numbers = #tpu.dot_dimension_numbers<[1], [0], [0], [1], [0, 0, 1, 1], [], []>} : vector<16x256xbf16>, vector<256x128xbf16>, vector<16x128xf32> -> vector<16x128xf32>
    %21 = vector.extract_strided_slice %17 {offsets = [0, 0], sizes = [1, 128], strides = [1, 1]} : vector<2x128xf32> to vector<1x128xf32>
    %22 = vector.broadcast %21 : vector<1x128xf32> to vector<16x128xf32>
    %23 = arith.addf %20, %22 : vector<16x128xf32>
    %cst_18 = arith.constant 0.000000e+00 : f32
    %24 = vector.broadcast %cst_18 : f32 to vector<16x128xf32>
    %25 = arith.maximumf %23, %24 : vector<16x128xf32>
    %26 = vector.extract_strided_slice %17 {offsets = [1, 0], sizes = [1, 128], strides = [1, 1]} : vector<2x128xf32> to vector<1x128xf32>
    %27 = vector.broadcast %26 : vector<1x128xf32> to vector<16x128xf32>
    %28 = arith.mulf %25, %27 : vector<16x128xf32>
    %cst_19 = arith.constant dense<0.000000e+00> : vector<16xf32>
    %29 = vector.multi_reduction <add>, %28, %cst_19 [1] : vector<16x128xf32> to vector<16xf32>
    %30 = vector.shape_cast %29 : vector<16xf32> to vector<16x1xf32>
    %c0_20 = arith.constant 0 : index
    %31 = memref.load %arg9[%c0_20] : memref<1xf32, #tpu.memory_space<smem>>
    %32 = vector.broadcast %31 : f32 to vector<16x1xf32>
    %33 = arith.addf %30, %32 : vector<16x1xf32>
    %cst_21 = arith.constant 0.000000e+00 : f32
    %34 = vector.broadcast %cst_21 : f32 to vector<16x1xf32>
    %35 = arith.maximumf %33, %34 : vector<16x1xf32>
    %c0_22 = arith.constant 0 : index
    %c0_23 = arith.constant 0 : index
    %36 = vector.load %arg8[%c0_22, %c0_23] : memref<4x1xf32, #tpu.memory_space<vmem>>, vector<4x1xf32>
    %37 = vector.extract_strided_slice %36 {offsets = [0, 0], sizes = [1, 1], strides = [1, 1]} : vector<4x1xf32> to vector<1x1xf32>
    %38 = vector.broadcast %37 : vector<1x1xf32> to vector<16x1xf32>
    %39 = arith.mulf %1, %38 : vector<16x1xf32>
    %40 = vector.extract_strided_slice %36 {offsets = [1, 0], sizes = [1, 1], strides = [1, 1]} : vector<4x1xf32> to vector<1x1xf32>
    %41 = vector.broadcast %40 : vector<1x1xf32> to vector<16x1xf32>
    %42 = arith.mulf %9, %41 : vector<16x1xf32>
    %43 = arith.addf %39, %42 : vector<16x1xf32>
    %44 = vector.extract_strided_slice %36 {offsets = [2, 0], sizes = [1, 1], strides = [1, 1]} : vector<4x1xf32> to vector<1x1xf32>
    %45 = vector.broadcast %44 : vector<1x1xf32> to vector<16x1xf32>
    %46 = arith.mulf %35, %45 : vector<16x1xf32>
    %47 = arith.addf %43, %46 : vector<16x1xf32>
    %48 = vector.extract_strided_slice %36 {offsets = [3, 0], sizes = [1, 1], strides = [1, 1]} : vector<4x1xf32> to vector<1x1xf32>
    %49 = vector.broadcast %48 : vector<1x1xf32> to vector<16x1xf32>
    %50 = arith.addf %47, %49 : vector<16x1xf32>
    %51 = math.absf %50 : vector<16x1xf32>
    %cst_24 = arith.constant 0.000000e+00 : f32
    %52 = vector.broadcast %cst_24 : f32 to vector<16x1xf32>
    %53 = arith.subf %52, %51 : vector<16x1xf32>
    %54 = math.exp %53 : vector<16x1xf32>
    %cst_25 = arith.constant 1.000000e+00 : f32
    %55 = vector.broadcast %cst_25 : f32 to vector<16x1xf32>
    %56 = arith.addf %55, %54 : vector<16x1xf32>
    %cst_26 = arith.constant 1.000000e+00 : f32
    %57 = vector.broadcast %cst_26 : f32 to vector<16x1xf32>
    %58 = arith.divf %57, %56 : vector<16x1xf32>
    %cst_27 = arith.constant 0.000000e+00 : f32
    %59 = vector.broadcast %cst_27 : f32 to vector<16x1xf32>
    %60 = arith.cmpf oge, %50, %59 : vector<16x1xf32>
    %61 = arith.mulf %54, %58 : vector<16x1xf32>
    %62 = arith.select %60, %58, %61 : vector<16x1xi1>, vector<16x1xf32>
    %c0_28 = arith.constant 0 : index
    %c0_29 = arith.constant 0 : index
    %63 = vector.load %arg10[%c0_28, %c0_29] : memref<16x1xf32, #tpu.memory_space<vmem>>, vector<16x1xf32>
    tpu.vector_store %arg10[%c0_28, %c0_29], %62 {strides = array<i32>} : memref<16x1xf32, #tpu.memory_space<vmem>>, vector<16x1xf32>,
    return
  }
  func.func @transform_0(%arg0: i32) -> (i32, i32) {
    %c0_i32 = arith.constant 0 : i32
    %c0_i32_0 = arith.constant 0 : i32
    return %arg0, %c0_i32 : i32, i32
  }
  func.func @transform_1(%arg0: i32) -> (i32, i32) {
    %c0_i32 = arith.constant 0 : i32
    %c0_i32_0 = arith.constant 0 : i32
    return %arg0, %c0_i32 : i32, i32
  }
  func.func @transform_2(%arg0: i32) -> (i32, i32) {
    %c0_i32 = arith.constant 0 : i32
    %c0_i32_0 = arith.constant 0 : i32
    %c0_i32_1 = arith.constant 0 : i32
    return %c0_i32, %c0_i32_0 : i32, i32
  }
  func.func @transform_3(%arg0: i32) -> (i32, i32) {
    %c0_i32 = arith.constant 0 : i32
    %c0_i32_0 = arith.constant 0 : i32
    %c0_i32_1 = arith.constant 0 : i32
    return %c0_i32, %c0_i32_0 : i32, i32
  }
  func.func @transform_4(%arg0: i32) -> (i32, i32) {
    %c0_i32 = arith.constant 0 : i32
    %c0_i32_0 = arith.constant 0 : i32
    %c0_i32_1 = arith.constant 0 : i32
    return %c0_i32, %c0_i32_0 : i32, i32
  }
  func.func @transform_5(%arg0: i32) -> (i32, i32) {
    %c0_i32 = arith.constant 0 : i32
    %c0_i32_0 = arith.constant 0 : i32
    %c0_i32_1 = arith.constant 0 : i32
    return %c0_i32, %c0_i32_0 : i32, i32
  }
  func.func @transform_6(%arg0: i32) -> (i32, i32) {
    %c0_i32 = arith.constant 0 : i32
    %c0_i32_0 = arith.constant 0 : i32
    %c0_i32_1 = arith.constant 0 : i32
    return %c0_i32, %c0_i32_0 : i32, i32
  }
  func.func @transform_7(%arg0: i32) -> (i32, i32) {
    %c0_i32 = arith.constant 0 : i32
    %c0_i32_0 = arith.constant 0 : i32
    %c0_i32_1 = arith.constant 0 : i32
    return %c0_i32, %c0_i32_0 : i32, i32
  }
  func.func @transform_8(%arg0: i32) -> i32 {
    %c0_i32 = arith.constant 0 : i32
    %c0_i32_0 = arith.constant 0 : i32
    return %c0_i32 : i32
  }
  func.func @transform_9(%arg0: i32) -> (i32, i32) {
    %c0_i32 = arith.constant 0 : i32
    %c0_i32_0 = arith.constant 0 : i32
    return %arg0, %c0_i32 : i32, i32
  }
}

</mosaic_0001>

<bundles_post_ra>
// kernel: tpu_custom_call.1
= control target key start
LH: loop header
LB: loop body
LE: loop exit
PB: predicated region body
PF: predicated region fallthrough
CT: control target
= control target key end

     0   :  { %15 = vsyncpa [#allocation4], 0  ;;  %s743_s0 = inlined_call_operand.vmem [shape: bf16[16,30], index: 0, kind: input, shape index: {}]   ;;  %s744_s1 = inlined_call_operand.vmem [shape: f32[16,1], index: 1, kind: input, shape index: {}]   ;;  %s745_s2 = inlined_call_operand.vmem [shape: bf16[30,30], index: 2, kind: input, shape index: {}]   ;;  %s746_s3 = inlined_call_operand.hbm [shape: bf16[30,256], index: 3, kind: input, shape index: {}]   ;;  %s747_s4 = inlined_call_operand.vmem [shape: f32[1,256], index: 4, kind: input, shape index: {}]   ;;  %s748_s5 = inlined_call_operand.hbm [shape: bf16[256,128], index: 5, kind: input, shape index: {}]   ;;  %s749_s6 = inlined_call_operand.vmem [shape: f32[2,128], index: 6, kind: input, shape index: {}]   ;;  %s750_s7 = inlined_call_operand.vmem [shape: f32[4,1], index: 7, kind: input, shape index: {}]   ;;  %s751_s8 = inlined_call_operand.<no memory space> [shape: f32[1], index: 8, kind: input, shape index: {}]   ;;  %s752_s9 = inlined_call_operand.vmem [shape: f32[16,1], index: 9, kind: output, shape index: {}]  }
   0x1   :  { %16 = vsyncpa [#allocation6], 0  ;;  %s632_s30 = smov [#allocation3]  }
   0x2   :  { %s28_s10 = sshll.u32 %s632_s30, 4  ;;  %s29_s10 = int_to_ptr.vmem [resolvable:$true] %s28_s10 }
   0x3   :  { %s596_s11 = scalar_lea.vmem %s29_s10, 512  ;;  %p601_p1 = scmp.lt.s32.totalorder %s29_s10, %s29_s10 }
   0x4   :  { %p597_p0 = scmp.ne.s32.totalorder %s29_s10, %s596_s11  ;;  %p602_p2 = scmp.lt.s32.totalorder %s596_s11, %s596_s11 }
   0x6   :  { %p603_p3 = por %p602_p2, %p601_p1 }
   0x8   :  { %p604_p4 = pnand %p603_p3, %p597_p0 }
   0xa   :  { %607 = shalt.err (!%p604_p4)
}
   0xb   :  { %s633_s12 = smov 128   ;;  %s634_s13 = smov 8  }
   0xc   :  { %34 = dma.hbm_to_vmem [thread:$0]  %s746_s3, 512, %s29_s10, [#allocation4], %s633_s12, %s633_s12, %s634_s13  }
   0xd   :  { %s635_s16 = smov [#allocation5]  }
   0xe   :  { %s42_s17 = sshll.u32 %s635_s16, 4  ;;  %s43_s17 = int_to_ptr.vmem [resolvable:$true] %s42_s17 }
   0xf   :  { %s616_s18 = scalar_lea.vmem %s43_s17, 2048  ;;  %p621_p6 = scmp.lt.s32.totalorder %s43_s17, %s43_s17 }
  0x10   :  { %p617_p5 = scmp.ne.s32.totalorder %s43_s17, %s616_s18  ;;  %p622_p7 = scmp.lt.s32.totalorder %s616_s18, %s616_s18 }
  0x12   :  { %p623_p8 = por %p622_p7, %p621_p6 }
  0x14   :  { %p624_p9 = pnand %p623_p8, %p617_p5 }
  0x16   :  { %627 = shalt.err (!%p624_p9)
}
  0x17   :  { %s636_s19 = smov 64   ;;  %s637_s20 = smov 4  }
  0x18   :  { %48 = dma.hbm_to_vmem [thread:$0]  %s748_s5, 2048, %s43_s17, [#allocation6], %s636_s19, %s636_s19, %s637_s20  }
  0x19   :  { %628 = dma.done.wait [#allocation4], 512  }
  0x1a   :  { %629 = vsyncadd [#allocation4], 4294966784 }
  0x1b   :  { %630 = dma.done.wait [#allocation6], 2048  }
  0x1c   :  { %631 = vsyncadd [#allocation6], 4294965248  ;;  %v638_v0 = vmov 0.0   ;;  %vm639_vm0 = vmmov 0   ;;  %vm90_vm1 = vcmask 1046528   ;;  %v555_v3 = vld [vmem:[%s745_s2] sm:$0xff]   ;;  %v153_v28 = vlaneseq }
  0x1d   :  { %537 = vmatprep.subr.bf16.mxu1 %v638_v0  ;;  %541 = vmatprep.mubr.msk.bf16.mxu1 %vm639_vm0, %v638_v0  ;;  %v554_v1 = vld [vmem:[%s745_s2 + $0x8] sm:$0x7f]   ;;  %v62_v4 = vld [vmem:[%s743_s0] sm:$0xff]   ;;  %v557_v5 = vld [vmem:[#allocation3 + $0x14] ss:$8 sps:$4 sm:$0x7f]  }
  0x1e   :  { %v92_v2 = vsel %vm90_vm1, %v554_v1, 0  ;;  %v559_v6 = vld [vmem:[#allocation3 + $0x10] ss:$8 sps:$4 sm:$0x7f]   ;;  %vm86_vm2 = vcmask 244736   ;;  %v567_v14 = vld [vmem:[#allocation5 + $0x68] sm:$0xff]   ;;  %v135_v27 = vunpack.c.l.bf16 %v62_v4  ;;  %v136_v31 = vunpack.c.h.bf16 %v62_v4 }
  0x1f   :  { %538 = vmatpush3.bf16.msra.mxu1 %v92_v2  ;;  %v563_v7 = vld [vmem:[#allocation5 + $0x78] sm:$0xff]   ;;  %v562_v8 = vld [vmem:[#allocation3 + $0x4] ss:$8 sps:$4 sm:$0xff]   ;;  %v182_v10 = vsel %vm90_vm1, %v559_v6, 0  ;;  %v565_v11 = vld [vmem:[#allocation5 + $0x70] sm:$0xff]   ;;  %v640_v15 = vmov 0  }
  0x20   :  { %539 = vmatprep.subr.bf16.mxu1 %v638_v0  ;;  %515 = vmatprep.subr.bf16.mxu0 %v563_v7  ;;  %v564_v9 = vld [vmem:[#allocation5 + $0x38] sm:$0xff]   ;;  %v560_v12 = vld [vmem:[#allocation3] ss:$8 sps:$4 sm:$0xff]   ;;  %v566_v13 = vld [vmem:[#allocation5 + $0x30] sm:$0xff]   ;;  %v711_v33 = vshrl.u32 %v153_v28, 7  ;;  %vm477_vm3 = vcmask 7168  }
  0x21   :  { %516 = vmatpush3.bf16.msra.mxu0 %v564_v9  ;;  %v568_v16 = vld [vmem:[#allocation5 + $0x28] sm:$0xff]   ;;  %v569_v17 = vld [vmem:[#allocation5 + $0x60] sm:$0xff]   ;;  %v571_v19 = vld [vmem:[#allocation5 + $0x58] sm:$0xff]  }
  0x22   :  { %517 = vmatprep.subr.bf16.mxu0 %v565_v11  ;;  %v570_v18 = vld [vmem:[#allocation5 + $0x20] sm:$0xff]   ;;  %v572_v20 = vld [vmem:[#allocation5 + $0x18] sm:$0xff]   ;;  %v573_v21 = vld [vmem:[#allocation5 + $0x50] sm:$0xff]   ;;  %v159_v37 = vsub.s32 1, %v711_v33  ;;  %v155_v39 = vsub.s32 0, %v711_v33 }
  0x23   :  { %540 = vmatpush3.bf16.msra.mxu1 %v555_v3  ;;  %v574_v22 = vld [vmem:[#allocation5 + $0x10] sm:$0xff]   ;;  %v575_v23 = vld [vmem:[#allocation5 + $0x48] sm:$0xff]   ;;  %v577_v25 = vld [vmem:[#allocation5 + $0x40] sm:$0xff]  }
  0x24   :  { %494 = vmatprep.subr.msk.bf16.mxu1 %vm90_vm1, %v557_v5  ;;  %v576_v24 = vld [vmem:[#allocation5 + $0x8] sm:$0xff]   ;;  %v578_v26 = vld [vmem:[#allocation5] sm:$0xff]  }
  0x25   :  { %518 = vmatpush3.bf16.msra.mxu0 %v566_v13  ;;  %v151_v41 = vld [vmem:[%s747_s4] sm:$0x3] }
  0x26   :  { %542 = vmatmul.mubr.msk.bf16.vlgmr.msra.gmra.mxu1 %vm86_vm2, %v62_v4  ;;  %519 = vmatprep.subr.bf16.mxu0 %v567_v14  ;;  %v160_v43 = vrot.slane %v151_v41, %v159_v37  ;;  %v156_v44 = vrot.slane %v151_v41, %v155_v39  ;;  %v234_v58 = vld [vmem:[%s749_s6] sm:$0x3] }
  0x27   :  { %200 = vmatpush1.bf16.msra.mxu1 %v182_v10  ;;  %219 = vmatprep.mubr.bf16.mxu1 %v640_v15  ;;  %v272_v60 = vrot.slane %v234_v58, %v155_v39  ;;  %v415_v1 = vrot.slane %v234_v58, %v159_v37  ;;  %v428_v10 = vld [vmem:[%s750_s7] sm:$0xf]  ;;  %v445_v15 = vsub.s32 2, %v711_v33 }
  0x28   :  { %201 = vmatprep.subr.bf16.mxu1 %v562_v8  ;;  %v432_v11 = vrot.slane %v428_v10, %v155_v39  ;;  %v438_v13 = vrot.slane %v428_v10, %v159_v37 }
  0x29   :  { %520 = vmatpush3.bf16.msra.mxu0 %v568_v16 }
  0x2a   :  { %521 = vmatprep.subr.bf16.mxu0 %v569_v17  ;;  %v423_v17 = vstv %s751_s8 }
  0x2b   :  { %202 = vmatpush1.bf16.msra.mxu1 %v560_v12  ;;  %v64_v12 = vld [vmem:[%s744_s1] sm:$0xff] }
  0x2d   :  { %522 = vmatpush3.bf16.msra.mxu0 %v570_v18  ;;  %v433_v18 = vmul.f32 %v432_v11, %v64_v12 }
  0x2e   :  { %495 = vmatmul.mubr.msk.bf16.vlgmr.msra.gmra.mxu1 %vm86_vm2, %v62_v4  ;;  %523 = vmatprep.subr.bf16.mxu0 %v571_v19  ;;  %v453_v19 = vsub.s32 3, %v711_v33 }
  0x30   :  { %v454_v28 = vrot.slane %v428_v10, %v453_v19 }
  0x31   :  { %524 = vmatpush3.bf16.msra.mxu0 %v572_v20 }
  0x32   :  { %525 = vmatprep.subr.bf16.mxu0 %v573_v21 }
  0x35   :  { %526 = vmatpush3.bf16.msra.mxu0 %v574_v22  ;;  %v65_v22 = vld [vmem:[%s744_s1 + $0x8] sm:$0xff] }
  0x36   :  { %527 = vmatprep.subr.bf16.mxu0 %v575_v23 }
  0x39   :  { %528 = vmatpush3.bf16.msra.mxu0 %v576_v24  ;;  %v446_v24 = vrot.slane %v428_v10, %v445_v15 }
  0x3a   :  { %529 = vmatprep.subr.bf16.mxu0 %v577_v25 }
  0x3d   :  { %530 = vmatpush3.bf16.msra.mxu0 %v578_v26 }
  0xe6   :  { %v128_v29 = vpop.f32.mrf.mxu1 }
  0xe7   :  { %v137_v30 = vmul.f32 %v135_v27, %v128_v29  ;;  %v434_v27 = vmul.f32 %v432_v11, %v65_v22 }
  0xe8   :  { %v543_v32 = vpop.f32.mrf.mxu1 }
  0xe9   :  { %v139_v34 = vsel %vm86_vm2, %v137_v30, 0.0 }
  0xea   :  { %140 = vadd.xlane.f32.xlu0 %v139_v34  ;;  %v131_v35 = vpop.f32.mrf.mxu1 }
  0xeb   :  { %v138_v36 = vmul.f32 %v136_v31, %v131_v35 }
  0xec   :  { %v544_v38 = vpop.f32.mrf.mxu1 }
  0xed   :  { %v142_v40 = vsel %vm86_vm2, %v138_v36, 0.0 }
  0xee   :  { %143 = vadd.xlane.f32.xlu0 %v142_v40  ;;  %v221_v42 = vpop.f32.mrf.mxu1 }
  0xef   :  { %v222_v49 = vadd.f32 %v221_v42, %v156_v44 }
  0xf0   :  { %v223_v45 = vpop.f32.mrf.mxu1 }
  0xf1   :  { %v224_v47 = vadd.f32 %v223_v45, %v160_v43  ;;  %v230_v55 = vmax.f32 %v222_v49, 0.0 }
  0xf2   :  { %v225_v46 = vpop.f32.mrf.mxu1 }
  0xf3   :  { %v226_v48 = vadd.f32 %v225_v46, %v156_v44  ;;  %v231_v53 = vmax.f32 %v224_v47, 0.0 }
  0xf4   :  { %v227_v50 = vpop.f32.mrf.mxu1 }
  0xf5   :  { %v228_v51 = vadd.f32 %v227_v50, %v160_v43  ;;  %v232_v52 = vmax.f32 %v226_v48, 0.0 }
  0xf7   :  { %v233_v54 = vmax.f32 %v228_v51, 0.0  ;;  %v235_v57 = vpack.c.bf16 %v232_v52, %v230_v55 }
  0xf9   :  { %v236_v56 = vpack.c.bf16 %v233_v54, %v231_v53 }
  0xfb   :  { %401 = vmatprep.mubr.bf16.mxu0 %v236_v56 }
  0xfc   :  { %402 = vmatmul.mubr.bf16.vlgmr.msra.gmra.mxu0 %v235_v57 }
 0x173   :  { %v141_v9 = vpop.xlane.xlu0 %140 }
 0x174   :  { %v145_v14 = vmul.f32 0.5, %v141_v9 }
 0x176   :  { %v439_v21 = vmul.f32 %v438_v13, %v145_v14 }
 0x177   :  { %v144_v16 = vpop.xlane.xlu0 %143 }
 0x178   :  { %v146_v23 = vmul.f32 0.5, %v144_v16  ;;  %v441_v30 = vadd.f32 %v439_v21, %v433_v18 }
 0x17a   :  { %v440_v31 = vmul.f32 %v438_v13, %v146_v23 }
 0x17c   :  { %v442_v33 = vadd.f32 %v440_v31, %v434_v27 }
 0x1bc   :  { %v531_v59 = vpop.f32.mrf.mxu0 }
 0x1be   :  { %v532_v61 = vpop.f32.mrf.mxu0 }
 0x1bf   :  { %v533_v62 = vadd.f32 %v532_v61, %v531_v59 }
 0x1c0   :  { %v534_v63 = vpop.f32.mrf.mxu0 }
 0x1c1   :  { %v404_v0 = vadd.f32 %v533_v62, %v272_v60 }
 0x1c2   :  { %v535_v2 = vpop.f32.mrf.mxu0 }
 0x1c3   :  { %v536_v3 = vadd.f32 %v535_v2, %v534_v63  ;;  %v410_v4 = vmax.f32 %v404_v0, 0.0 }
 0x1c5   :  { %v407_v5 = vadd.f32 %v536_v3, %v272_v60  ;;  %v416_v6 = vmul.f32 %v415_v1, %v410_v4 }
 0x1c7   :  { %v411_v7 = vmax.f32 %v407_v5, 0.0  ;;  %418 = vadd.xlane.f32.xlu1 %v416_v6 }
 0x1c9   :  { %v417_v8 = vmul.f32 %v415_v1, %v411_v7 }
 0x1cb   :  { %420 = vadd.xlane.f32.xlu1 %v417_v8 }
 0x250   :  { %v419_v20 = vpop.xlane.xlu1 %418 }
 0x251   :  { %v424_v25 = vadd.f32 %v423_v17, %v419_v20 }
 0x253   :  { %v426_v26 = vmax.f32 %v424_v25, 0.0 }
 0x254   :  { %v421_v29 = vpop.xlane.xlu1 %420 }
 0x255   :  { %v447_v32 = vmul.f32 %v446_v24, %v426_v26  ;;  %v425_v34 = vadd.f32 %v423_v17, %v421_v29 }
 0x257   :  { %v449_v35 = vadd.f32 %v447_v32, %v441_v30  ;;  %v427_v36 = vmax.f32 %v425_v34, 0.0 }
 0x259   :  { %v455_v37 = vadd.f32 %v454_v28, %v449_v35  ;;  %v448_v38 = vmul.f32 %v446_v24, %v427_v36 }
 0x25b   :  { %v457_v39 = vand.u32 2147483647, %v455_v37  ;;  %v450_v40 = vadd.f32 %v448_v38, %v442_v33  ;;  %vm471_vm4 = vcmp.ge.f32.partialorder %v455_v37, 0.0 }
 0x25d   :  { %v459_v41 = vsub.f32 0.0, %v457_v39  ;;  %v456_v42 = vadd.f32 %v454_v28, %v450_v40 }
 0x25f   :  { %v461_v43 = vmul.f32 1.442695, %v459_v41  ;;  %v458_v44 = vand.u32 2147483647, %v456_v42  ;;  %vm472_vm5 = vcmp.ge.f32.partialorder %v456_v42, 0.0 }
 0x261   :  { %580 = vpow2.f32 %v461_v43  ;;  %v460_v45 = vsub.f32 0.0, %v458_v44 }
 0x263   :  { %v463_v46 = vmul.f32 1.442695, %v460_v45 }
 0x265   :  { %582 = vpow2.f32 %v463_v46 }
 0x26e   :  { %v581_v47 = vpop.eup %580 }
 0x26f   :  { %v465_v48 = vadd.f32 1.0, %v581_v47 }
 0x271   :  { %584 = vrcp.f32 %v465_v48 }
 0x272   :  { %v583_v49 = vpop.eup %582 }
 0x273   :  { %v466_v50 = vadd.f32 1.0, %v583_v49 }
 0x275   :  { %586 = vrcp.f32 %v466_v50 }
 0x27e   :  { %v585_v51 = vpop.eup %584 }
 0x27f   :  { %v473_v52 = vmul.f32 %v585_v51, %v581_v47 }
 0x281   :  { %v475_v53 = vsel %vm471_vm4, %v585_v51, %v473_v52 }
 0x282   :  { %v587_v54 = vpop.eup %586  ;;  %478 = vst.msk [vmem:[%s752_s9] sm:$0xff] %vm477_vm3, %v475_v53 }
 0x283   :  { %v474_v55 = vmul.f32 %v587_v54, %v583_v49 }
 0x285   :  { %v476_v56 = vsel %vm472_vm5, %v587_v54, %v474_v55 }
 0x286   :  { %479 = vst.msk [vmem:[%s752_s9 + $0x8] sm:$0xff] %vm477_vm3, %v476_v56 }
 0x287   :  { %484 = vsyncpa [#allocation4], 1 }
 0x288   :  { %485 = vsyncpa [#allocation6], 1 }

</bundles_post_ra>
